<compile_context>
chip_gen: v6e
topology: v6e:2x2x1
jax: 0.10.0
libtpu: 0.0.40
codegen_flags: <defaults>
</compile_context>

<pallas_src>
import jax
import jax.numpy as jnp
from jax.experimental import pallas as pl
from jax.experimental.pallas import tpu as pltpu

_LANES = 128


def _logreg_kernel(b_ref, x_ref, w_ref, o_ref):
    # b_ref: SMEM (1,)          bias (scalar prefetch)
    # x_ref: VMEM (TR, 256)     feature-interleaved batch slab
    #                           lane 2k -> feature0, lane 2k+1 -> feature1
    # w_ref: VMEM (256, 128)    lane-deinterleaving expanded weight (resident:
    #                           constant index_map -> DMA'd once)
    # o_ref: VMEM (TR, 128)     lane-dense sigmoid output
    z = jnp.dot(x_ref[...], w_ref[...], preferred_element_type=jnp.float32)
    o_ref[...] = jax.nn.sigmoid(z + b_ref[0])      # exp on EUP, compact lanes


def logistic_regression(x, weight, bias, *, block_rows=4096):
    """x: (B, 2) f32, weight: (1, 2) f32, bias: (1,) f32 -> (B, 1) f32."""
    B, F = x.shape
    assert F == 2, "LogisticRegression spec is nn.Linear(2, 1)"

    w = weight.reshape(-1).astype(jnp.float32)      # (2,)
    b = bias.reshape(-1).astype(jnp.float32)        # (1,)

    # Tiny-batch fallback: a padded, pipelined kernel launch would do massive
    # redundant HBM traffic for B < one 128-lane row.
    if B < _LANES:
        xf = x.astype(jnp.float32)
        return jax.nn.sigmoid(xf @ w.reshape(F, 1) + b)

    # --- tiling --------------------------------------------------------------
    rows = pl.cdiv(B, _LANES)                       # 128-sample slab rows
    tr_cap = max(8, (int(block_rows) // 8) * 8)     # requested rows/tile
    n_tiles = pl.cdiv(rows, tr_cap)
    tr = ((pl.cdiv(rows, n_tiles) + 7) // 8) * 8    # balanced tile, mult of 8
    rows_p = n_tiles * tr                           # exceeds `rows` by <8/tile
    bp = rows_p * _LANES                            # padded sample count

    # --- layout plumbing (no transpose, contiguous reshape only) -------------
    xf = x if x.dtype == jnp.float32 else x.astype(jnp.float32)
    x_pad = xf if bp == B else jnp.pad(xf, ((0, bp - B), (0, 0)))
    xs = x_pad.reshape(rows_p, F * _LANES)          # free reshape, interleaved

    # Expanded weight: z[:, k] = xs[:, 2k]*w0 + xs[:, 2k+1]*w1  (128 KiB)
    eye = jnp.eye(_LANES, dtype=jnp.float32)
    w_exp = jnp.stack((eye * w[0], eye * w[1]), axis=1).reshape(F * _LANES,
                                                                _LANES)

    out_slab = pl.pallas_call(
        _logreg_kernel,
        out_shape=jax.ShapeDtypeStruct((rows_p, _LANES), jnp.float32),
        grid_spec=pltpu.PrefetchScalarGridSpec(
            num_scalar_prefetch=1,                  # bias -> SMEM
            grid=(n_tiles,),
            in_specs=[
                pl.BlockSpec((tr, F * _LANES), lambda i, b: (i, 0)),
                pl.BlockSpec((F * _LANES, _LANES), lambda i, b: (0, 0)),
            ],
            out_specs=pl.BlockSpec((tr, _LANES), lambda i, b: (i, 0)),
        ),
        compiler_params=pltpu.CompilerParams(
            dimension_semantics=("parallel",),
        ),
    )(b, xs, w_exp)

    # (rows_p, 128) -> (bp, 1); skip the tail-slice copy when B is aligned.
    out = out_slab.reshape(bp, 1)
    return out if bp == B else out[:B]


if __name__ == "__main__":
    key = jax.random.PRNGKey(0)
    kx1, kw, kb, kx2, kx3 = jax.random.split(key, 5)

    F = 2  # nn.Linear(2, 1)
    bound = 1.0 / jnp.sqrt(jnp.float32(F))
    weight = jax.random.uniform(kw, (1, F), minval=-bound, maxval=bound,
                                dtype=jnp.float32)
    bias = jax.random.uniform(kb, (1,), minval=-bound, maxval=bound,
                              dtype=jnp.float32)

    def ref_fn(x):
        return jax.nn.sigmoid(x @ weight.T + bias)

    # 1) Slab-aligned batch: fast path (no pad, no tail slice), 1 grid step.
    B1 = 2048
    x1 = jax.random.normal(kx1, (B1, F), dtype=jnp.float32)
    out1 = logistic_regression(x1, weight, bias)
    jax.block_until_ready(out1)
    assert out1.shape == (B1, 1)
    assert jnp.allclose(out1, ref_fn(x1), atol=1e-4), "mismatch (B=2048)"

    # 2) Unaligned batch + multi-tile pipelined path (tr=8 -> 3 grid steps).
    #    (block_rows=8 only to exercise the pipeline; not a production value.)
    B2 = 3000
    x2 = jax.random.normal(kx2, (B2, F), dtype=jnp.float32)
    out2 = logistic_regression(x2, weight, bias, block_rows=8)
    jax.block_until_ready(out2)
    assert out2.shape == (B2, 1)
    assert jnp.allclose(out2, ref_fn(x2), atol=1e-4), "mismatch (B=3000)"

    # 3) Tiny batch: pure-JAX fallback path.
    B3 = 8
    x3 = jax.random.normal(kx3, (B3, F), dtype=jnp.float32)
    out3 = logistic_regression(x3, weight, bias)
    jax.block_until_ready(out3)
    assert out3.shape == (B3, 1)
    assert jnp.allclose(out3, ref_fn(x3), atol=1e-5), "mismatch (B=8)"

    print("KERNEL_OK")
</pallas_src>

<mosaic_0001>
module attributes {stable_mosaic.version = 11 : i64} {
  func.func @_logreg_kernel(%arg0: i32, %arg1: memref<1xf32, #tpu.memory_space<smem>>, %arg2: memref<16x256xf32, #tpu.memory_space<vmem>>, %arg3: memref<256x128xf32, #tpu.memory_space<vmem>>, %arg4: memref<16x128xf32, #tpu.memory_space<vmem>>) attributes {dimension_semantics = [#tpu.dimension_semantics<parallel>], iteration_bounds = array<i64: 1>, scalar_prefetch = 1 : i64, scratch_operands = 0 : i64, tpu.core_type = #tpu.core_type<tc>, window_params = [{transform_indices = @transform_0, window_bounds = array<i64: 16, 256>}, {pipeline_mode = #tpu.pipeline_mode<synchronous>, transform_indices = @transform_1, window_bounds = array<i64: 256, 128>}, {transform_indices = @transform_2, window_bounds = array<i64: 16, 128>}]} {
    %c0 = arith.constant 0 : index
    %c0_0 = arith.constant 0 : index
    %0 = vector.load %arg2[%c0, %c0_0] : memref<16x256xf32, #tpu.memory_space<vmem>>, vector<16x256xf32>
    %c0_1 = arith.constant 0 : index
    %c0_2 = arith.constant 0 : index
    %1 = vector.load %arg3[%c0_1, %c0_2] : memref<256x128xf32, #tpu.memory_space<vmem>>, vector<256x128xf32>
    %cst = arith.constant dense<0.000000e+00> : vector<16x128xf32>
    %2 = tpu.matmul %0, %1, %cst {dimension_numbers = #tpu.dot_dimension_numbers<[1], [0], [0], [1], [0, 0, 1, 1], [], []>} : vector<16x256xf32>, vector<256x128xf32>, vector<16x128xf32> -> vector<16x128xf32>
    %c0_3 = arith.constant 0 : index
    %3 = memref.load %arg1[%c0_3] : memref<1xf32, #tpu.memory_space<smem>>
    %4 = vector.broadcast %3 : f32 to vector<16x128xf32>
    %5 = arith.addf %2, %4 : vector<16x128xf32>
    %6 = arith.negf %5 : vector<16x128xf32>
    %7 = math.exp %6 : vector<16x128xf32>
    %cst_4 = arith.constant 1.000000e+00 : f32
    %8 = vector.broadcast %cst_4 : f32 to vector<16x128xf32>
    %9 = arith.addf %8, %7 : vector<16x128xf32>
    %10 = arith.divf %8, %9 : vector<16x128xf32>
    %c0_5 = arith.constant 0 : index
    %c0_6 = arith.constant 0 : index
    %11 = vector.load %arg4[%c0_5, %c0_6] : memref<16x128xf32, #tpu.memory_space<vmem>>, vector<16x128xf32>
    tpu.vector_store %arg4[%c0_5, %c0_6], %10 {strides = array<i32>} : memref<16x128xf32, #tpu.memory_space<vmem>>, vector<16x128xf32>,
    return
  }
  func.func @transform_0(%arg0: i32, %arg1: memref<1xf32, #tpu.memory_space<smem>>) -> (i32, i32) {
    %c0_i32 = arith.constant 0 : i32
    %c0_i32_0 = arith.constant 0 : i32
    return %arg0, %c0_i32 : i32, i32
  }
  func.func @transform_1(%arg0: i32, %arg1: memref<1xf32, #tpu.memory_space<smem>>) -> (i32, i32) {
    %c0_i32 = arith.constant 0 : i32
    %c0_i32_0 = arith.constant 0 : i32
    %c0_i32_1 = arith.constant 0 : i32
    return %c0_i32, %c0_i32_0 : i32, i32
  }
  func.func @transform_2(%arg0: i32, %arg1: memref<1xf32, #tpu.memory_space<smem>>) -> (i32, i32) {
    %c0_i32 = arith.constant 0 : i32
    %c0_i32_0 = arith.constant 0 : i32
    return %arg0, %c0_i32 : i32, i32
  }
}

</mosaic_0001>

<bundles_post_ra>
// kernel: tpu_custom_call.1
= control target key start
LH: loop header
LB: loop body
LE: loop exit
PB: predicated region body
PF: predicated region fallthrough
CT: control target
= control target key end

     0   :  { %9 = vsyncpa [#allocation5], 0  ;;  %s385_s0 = inlined_call_operand.<no memory space> [shape: f32[1], index: 0, kind: input, shape index: {}]   ;;  %s386_s1 = inlined_call_operand.hbm [shape: f32[16,256], index: 1, kind: input, shape index: {}]   ;;  %s387_s2 = inlined_call_operand.hbm [shape: f32[256,128], index: 2, kind: input, shape index: {}]   ;;  %s388_s3 = inlined_call_operand.hbm [shape: f32[16,128], index: 3, kind: output, shape index: {}]  }
   0x1   :  { %10 = vsyncpa [#allocation8], 0 }
   0x2   :  { %11 = vsyncpa [#allocation6], 0  ;;  %s340_s12 = smov [#allocation4]  }
   0x3   :  { %s17_s13 = sshll.u32 %s340_s12, 4  ;;  %s18_s13 = int_to_ptr.vmem [resolvable:$true] %s17_s13 }
   0x4   :  { %s282_s14 = scalar_lea.vmem %s18_s13, 512  ;;  %p287_p1 = scmp.lt.s32.totalorder %s18_s13, %s18_s13 }
   0x5   :  { %p283_p0 = scmp.ne.s32.totalorder %s18_s13, %s282_s14  ;;  %p288_p2 = scmp.lt.s32.totalorder %s282_s14, %s282_s14 }
   0x7   :  { %p289_p3 = por %p288_p2, %p287_p1 }
   0x9   :  { %p290_p4 = pnand %p289_p3, %p283_p0 }
   0xb   :  { %293 = shalt.err (!%p290_p4)
}
   0xc   :  { %s341_s15 = smov 256   ;;  %s342_s16 = smov 16  }
   0xd   :  { %23 = dma.hbm_to_vmem [thread:$0]  %s386_s1, 512, %s18_s13, [#allocation5], %s341_s15, %s341_s15, %s342_s16  }
   0xe   :  { %s343_s19 = smov [#allocation7]  }
   0xf   :  { %s29_s20 = sshll.u32 %s343_s19, 4  ;;  %s30_s20 = int_to_ptr.vmem [resolvable:$true] %s29_s20 }
  0x10   :  { %s302_s21 = scalar_lea.vmem %s30_s20, 4096  ;;  %p307_p6 = scmp.lt.s32.totalorder %s30_s20, %s30_s20 }
  0x11   :  { %p303_p5 = scmp.ne.s32.totalorder %s30_s20, %s302_s21  ;;  %p308_p7 = scmp.lt.s32.totalorder %s302_s21, %s302_s21 }
  0x13   :  { %p309_p8 = por %p308_p7, %p307_p6 }
  0x15   :  { %p310_p9 = pnand %p309_p8, %p303_p5 }
  0x17   :  { %313 = shalt.err (!%p310_p9)
}
  0x18   :  { %s344_s22 = smov 128   ;;  %s345_s23 = smov 8  }
  0x19   :  { %35 = dma.hbm_to_vmem [thread:$0]  %s387_s2, 4096, %s30_s20, [#allocation8], %s344_s22, %s344_s22, %s345_s23  }
  0x1a   :  { %334 = dma.done.wait [#allocation5], 512  }
  0x1b   :  { %335 = vsyncadd [#allocation5], 4294966784 }
  0x1c   :  { %336 = dma.done.wait [#allocation8], 4096  }
  0x1d   :  { %337 = vsyncadd [#allocation8], 4294963200  ;;  %v77_v0 = vld [vmem:[#allocation7 + $0xf8] sm:$0xff]  ;;  %v76_v2 = vld [vmem:[#allocation7 + $0xf0] sm:$0xff]  ;;  %v79_v38 = vstv %s385_s0  ;;  %s346_s26 = smov [#allocation9]  }
  0x1e   :  { %v61_v1 = vld [vmem:[#allocation7 + $0x78] sm:$0xff]  ;;  %189 = vmatprep.subr.mxu0 %v77_v0  ;;  %227 = vmatprep.subr.mxu1 %v77_v0  ;;  %v60_v3 = vld [vmem:[#allocation7 + $0x70] sm:$0xff]  ;;  %v75_v4 = vld [vmem:[#allocation7 + $0xe8] sm:$0xff]  ;;  %s174_s27 = sshll.u32 %s346_s26, 4  ;;  %s175_s27 = int_to_ptr.vmem [resolvable:$true] %s174_s27 }
  0x1f   :  { %190 = vmatpush3.msra.mxu0 %v61_v1  ;;  %243 = vmatpush3.msra.mxu1 %v61_v1  ;;  %v59_v5 = vld [vmem:[#allocation7 + $0x68] sm:$0xff]  ;;  %v74_v6 = vld [vmem:[#allocation7 + $0xe0] sm:$0xff]  ;;  %v73_v8 = vld [vmem:[#allocation7 + $0xd8] sm:$0xff]  ;;  %s314_s0 = scalar_lea.vmem %s175_s27, 256  ;;  %p319_p11 = scmp.lt.s32.totalorder %s175_s27, %s175_s27 }
  0x20   :  { %191 = vmatprep.subr.mxu0 %v76_v2  ;;  %228 = vmatprep.subr.mxu1 %v76_v2  ;;  %v58_v7 = vld [vmem:[#allocation7 + $0x60] sm:$0xff]  ;;  %v57_v9 = vld [vmem:[#allocation7 + $0x58] sm:$0xff]  ;;  %v72_v10 = vld [vmem:[#allocation7 + $0xd0] sm:$0xff]  ;;  %p315_p10 = scmp.ne.s32.totalorder %s175_s27, %s314_s0  ;;  %p320_p12 = scmp.lt.s32.totalorder %s314_s0, %s314_s0 }
  0x21   :  { %192 = vmatpush3.msra.mxu0 %v60_v3  ;;  %244 = vmatpush3.msra.mxu1 %v60_v3  ;;  %v56_v11 = vld [vmem:[#allocation7 + $0x50] sm:$0xff]  ;;  %v71_v12 = vld [vmem:[#allocation7 + $0xc8] sm:$0xff]  ;;  %v70_v14 = vld [vmem:[#allocation7 + $0xc0] sm:$0xff] }
  0x22   :  { %193 = vmatprep.subr.mxu0 %v75_v4  ;;  %229 = vmatprep.subr.mxu1 %v75_v4  ;;  %v55_v13 = vld [vmem:[#allocation7 + $0x48] sm:$0xff]  ;;  %v54_v15 = vld [vmem:[#allocation7 + $0x40] sm:$0xff]  ;;  %v69_v16 = vld [vmem:[#allocation7 + $0xb8] sm:$0xff]  ;;  %p321_p13 = por %p320_p12, %p319_p11 }
  0x23   :  { %194 = vmatpush3.msra.mxu0 %v59_v5  ;;  %245 = vmatpush3.msra.mxu1 %v59_v5  ;;  %v53_v17 = vld [vmem:[#allocation7 + $0x38] sm:$0xff]  ;;  %v68_v18 = vld [vmem:[#allocation7 + $0xb0] sm:$0xff]  ;;  %v67_v20 = vld [vmem:[#allocation7 + $0xa8] sm:$0xff] }
  0x24   :  { %195 = vmatprep.subr.mxu0 %v74_v6  ;;  %230 = vmatprep.subr.mxu1 %v74_v6  ;;  %v52_v19 = vld [vmem:[#allocation7 + $0x30] sm:$0xff]  ;;  %v51_v21 = vld [vmem:[#allocation7 + $0x28] sm:$0xff]  ;;  %v66_v22 = vld [vmem:[#allocation7 + $0xa0] sm:$0xff]  ;;  %p322_p0 = pnand %p321_p13, %p315_p10 }
  0x25   :  { %196 = vmatpush3.msra.mxu0 %v58_v7  ;;  %246 = vmatpush3.msra.mxu1 %v58_v7  ;;  %v50_v23 = vld [vmem:[#allocation7 + $0x20] sm:$0xff]  ;;  %v65_v24 = vld [vmem:[#allocation7 + $0x98] sm:$0xff]  ;;  %v64_v26 = vld [vmem:[#allocation7 + $0x90] sm:$0xff] }
  0x26   :  { %197 = vmatprep.subr.mxu0 %v73_v8  ;;  %231 = vmatprep.subr.mxu1 %v73_v8  ;;  %v49_v25 = vld [vmem:[#allocation7 + $0x18] sm:$0xff]  ;;  %v48_v27 = vld [vmem:[#allocation7 + $0x10] sm:$0xff]  ;;  %v63_v28 = vld [vmem:[#allocation7 + $0x88] sm:$0xff] }
  0x27   :  { %198 = vmatpush3.msra.mxu0 %v57_v9  ;;  %247 = vmatpush3.msra.mxu1 %v57_v9  ;;  %v47_v29 = vld [vmem:[#allocation7 + $0x8] sm:$0xff]  ;;  %v62_v30 = vld [vmem:[#allocation7 + $0x80] sm:$0xff]  ;;  %v45_v33 = vld [vmem:[#allocation4 + $0x18] sm:$0xff] }
  0x28   :  { %199 = vmatprep.subr.mxu0 %v72_v10  ;;  %232 = vmatprep.subr.mxu1 %v72_v10  ;;  %v46_v31 = vld [vmem:[#allocation7] sm:$0xff]  ;;  %v43_v32 = vld [vmem:[#allocation4 + $0x8] sm:$0xff]  ;;  %v44_v35 = vld [vmem:[#allocation4 + $0x10] sm:$0xff] }
  0x29   :  { %200 = vmatpush3.msra.mxu0 %v56_v11  ;;  %248 = vmatpush3.msra.mxu1 %v56_v11  ;;  %v42_v34 = vld [vmem:[#allocation4] sm:$0xff] }
  0x2a   :  { %201 = vmatprep.subr.mxu0 %v71_v12  ;;  %233 = vmatprep.subr.mxu1 %v71_v12 }
  0x2b   :  { %202 = vmatpush3.msra.mxu0 %v55_v13  ;;  %249 = vmatpush3.msra.mxu1 %v55_v13 }
  0x2c   :  { %203 = vmatprep.subr.mxu0 %v70_v14  ;;  %234 = vmatprep.subr.mxu1 %v70_v14 }
  0x2d   :  { %204 = vmatpush3.msra.mxu0 %v54_v15  ;;  %250 = vmatpush3.msra.mxu1 %v54_v15 }
  0x2e   :  { %205 = vmatprep.subr.mxu0 %v69_v16  ;;  %235 = vmatprep.subr.mxu1 %v69_v16 }
  0x2f   :  { %206 = vmatpush3.msra.mxu0 %v53_v17  ;;  %251 = vmatpush3.msra.mxu1 %v53_v17 }
  0x30   :  { %207 = vmatprep.subr.mxu0 %v68_v18  ;;  %236 = vmatprep.subr.mxu1 %v68_v18 }
  0x31   :  { %208 = vmatpush3.msra.mxu0 %v52_v19  ;;  %252 = vmatpush3.msra.mxu1 %v52_v19 }
  0x32   :  { %209 = vmatprep.subr.mxu0 %v67_v20  ;;  %237 = vmatprep.subr.mxu1 %v67_v20 }
  0x33   :  { %210 = vmatpush3.msra.mxu0 %v51_v21  ;;  %253 = vmatpush3.msra.mxu1 %v51_v21 }
  0x34   :  { %211 = vmatprep.subr.mxu0 %v66_v22  ;;  %238 = vmatprep.subr.mxu1 %v66_v22 }
  0x35   :  { %212 = vmatpush3.msra.mxu0 %v50_v23  ;;  %254 = vmatpush3.msra.mxu1 %v50_v23 }
  0x36   :  { %213 = vmatprep.subr.mxu0 %v65_v24  ;;  %239 = vmatprep.subr.mxu1 %v65_v24 }
  0x37   :  { %214 = vmatpush3.msra.mxu0 %v49_v25  ;;  %255 = vmatpush3.msra.mxu1 %v49_v25 }
  0x38   :  { %215 = vmatprep.subr.mxu0 %v64_v26  ;;  %240 = vmatprep.subr.mxu1 %v64_v26 }
  0x39   :  { %216 = vmatpush3.msra.mxu0 %v48_v27  ;;  %256 = vmatpush3.msra.mxu1 %v48_v27 }
  0x3a   :  { %217 = vmatprep.subr.mxu0 %v63_v28  ;;  %241 = vmatprep.subr.mxu1 %v63_v28 }
  0x3b   :  { %218 = vmatpush3.msra.mxu0 %v47_v29  ;;  %257 = vmatpush3.msra.mxu1 %v47_v29 }
  0x3c   :  { %219 = vmatprep.subr.mxu0 %v62_v30  ;;  %242 = vmatprep.subr.mxu1 %v62_v30 }
  0x3d   :  { %220 = vmatpush3.msra.mxu0 %v46_v31  ;;  %258 = vmatpush3.msra.mxu1 %v46_v31 }
  0x3e   :  { %144 = vmatprep.mubr.f32.mxu0 %v43_v32  ;;  %149 = vmatprep.mubr.f32.mxu1 %v45_v33 }
  0x3f   :  { %145 = vmatmul.mubr.f32.vlgmr.msra.gmra.mxu0 %v42_v34  ;;  %150 = vmatmul.mubr.f32.vlgmr.msra.gmra.mxu1 %v44_v35 }
  0xff   :  { %v221_v36 = vpop.f32.mrf.mxu0  ;;  %v224_v37 = vpop.f32.mrf.mxu1 }
 0x101   :  { %v222_v39 = vpop.f32.mrf.mxu0  ;;  %v225_v40 = vpop.f32.mrf.mxu1 }
 0x102   :  { %v223_v41 = vadd.f32 %v222_v39, %v221_v36  ;;  %v226_v42 = vadd.f32 %v225_v40, %v224_v37 }
 0x104   :  { %v147_v43 = vadd.f32 %v223_v41, %v79_v38  ;;  %v152_v44 = vadd.f32 %v226_v42, %v79_v38 }
 0x106   :  { %v187_v45 = vmul.f32 -1.442695, %v147_v43  ;;  %v188_v46 = vmul.f32 -1.442695, %v152_v44 }
 0x108   :  { %266 = vpow2.f32 %v187_v45 }
 0x109   :  { %268 = vpow2.f32 %v188_v46 }
 0x115   :  { %v267_v47 = vpop.eup %266 }
 0x116   :  { %v269_v48 = vpop.eup %268  ;;  %v161_v49 = vadd.f32 1.0, %v267_v47 }
 0x117   :  { %v162_v50 = vadd.f32 1.0, %v269_v48 }
 0x118   :  { %270 = vrcp.f32 %v161_v49 }
 0x119   :  { %272 = vrcp.f32 %v162_v50 }
 0x125   :  { %v271_v51 = vpop.eup %270 }
 0x126   :  { %v273_v52 = vpop.eup %272  ;;  %167 = vst [vmem:[#allocation9] sm:$0xff] %v271_v51 }
 0x127   :  { %168 = vst [vmem:[#allocation9 + $0x8] sm:$0xff] %v273_v52 }
 0x128   :  { %325 = shalt.err (!%p322_p0)
}
 0x129   :  { %180 = dma.vmem_to_hbm [thread:$0]  %s175_s27, 256, %s388_s3, [#allocation6], %s344_s22, %s344_s22, %s345_s23  }
 0x12a   :  { %338 = dma.done.wait [#allocation6], 256  }
 0x12b   :  { %339 = vsyncadd [#allocation6], 4294967040 }
 0x12c   :  { %184 = vsyncpa [#allocation5], 1 }
 0x12d   :  { %185 = vsyncpa [#allocation8], 1 }
 0x12e   :  { %186 = vsyncpa [#allocation6], 1 }

</bundles_post_ra>
